<compile_context>
chip_gen: v7x
topology: tpu7x:2x2x1
jax: 0.10.0
libtpu: 0.0.40
codegen_flags: <defaults>
</compile_context>

<pallas_src>
import functools

import jax
import jax.numpy as jnp
from jax import lax
from jax.experimental import pallas as pl
from jax.experimental.pallas import tpu as pltpu

BN_EPS = 1e-5


def _batchnorm_onepass(h, gamma, beta, inv_b):
    """BatchNorm1d with batch stats (biased var), single sweep over h.

    sum(h) and sum(h*h) are independent sublane reductions (they overlap),
    then normalization is folded into one scale/shift FMA per element.
    """
    s1 = jnp.sum(h, axis=0, keepdims=True)
    s2 = jnp.sum(h * h, axis=0, keepdims=True)
    mean = s1 * inv_b
    var = jnp.maximum(s2 * inv_b - mean * mean, 0.0)
    scale = gamma * lax.rsqrt(var + BN_EPS)          # EUP rsqrt
    shift = beta - mean * scale
    return h * scale + shift


def _make_kernel(batch, in_size):
    """Builds the kernel body; batch / in_size / slab row offsets are static."""
    inv_b = 1.0 / float(batch)
    r_w3 = 0                  # rows [0, in_size): W3^T (one row per input feat)
    r_g2 = in_size            # gamma of bn_2
    r_b2 = in_size + 1        # beta  of bn_2
    r_g1 = in_size + 2        # gamma of bn_1
    r_b1 = in_size + 3        # beta  of bn_1
    r_w1 = in_size + 4        # linear_1 weight as a (1, W) row

    def kernel(x_ref, p_ref, w2t_ref, out_ref):
        x = x_ref[...]                                   # (B, in_size) f32
        p = p_ref[...]                                   # (rows_p, W)  f32

        # linear_3: degenerate K -> VPU broadcast-MACs instead of an MXU dot.
        h = x[:, 0:1] * p[r_w3:r_w3 + 1, :]
        for i in range(1, in_size):                      # unrolled (in_size=2)
            h = h + x[:, i:i + 1] * p[r_w3 + i:r_w3 + i + 1, :]

        # bn_2 (full-batch stats, single sweep)
        h = _batchnorm_onepass(h, p[r_g2:r_g2 + 1, :], p[r_b2:r_b2 + 1, :],
                               inv_b)

        # linear_2: the only matmul worth the MXU; f32 accumulate.
        h = jnp.dot(h, w2t_ref[...], preferred_element_type=jnp.float32)

        # bn_1
        h = _batchnorm_onepass(h, p[r_g1:r_g1 + 1, :], p[r_b1:r_b1 + 1, :],
                               inv_b)

        # linear_1: N = 1 -> elementwise multiply + lane reduce (XLU), no MXU.
        # (For large B a lane-dense (1, B) output layout would avoid masked
        #  single-lane stores; irrelevant at B = 8.)
        out_ref[...] = jnp.sum(h * p[r_w1:r_w1 + 1, :], axis=-1, keepdims=True)

    return kernel


def _padded_tile_bytes(rows, cols, itemsize=4):
    return (-(-rows // 8) * 8) * (-(-cols // 128) * 128) * itemsize


@functools.partial(jax.jit, static_argnames=())
def lnn3_forward(x, params):
    """x: (B, ...) flattened to (B, in_size). Returns logits (B, 1)."""
    w3t, g2, b2, w2t, g1, b1, w1 = params               # w1 is (1, width)
    B = x.shape[0]
    x2d = x.reshape(B, -1).astype(jnp.float32)           # nn.Flatten()
    in_size = x2d.shape[1]
    width = w2t.shape[0]

    # Coalesce all tiny parameter arrays into one (8-row-padded, W) slab:
    # one DMA + one padded VMEM tile instead of six. (In real use, pre-pack
    # this once outside the step function; it is constant across calls.)
    rows = in_size + 5
    rows_p = -(-rows // 8) * 8
    slab = jnp.concatenate([w3t, g2, b2, g1, b1, w1], axis=0)
    if rows_p > rows:
        slab = jnp.concatenate(
            [slab, jnp.zeros((rows_p - rows, width), jnp.float32)], axis=0)

    # Explicit VMEM budget (re-derived so the design is safe on v7x's 64 MiB):
    # operand tiles (x2 headroom for buffering) + f32 intermediates h.
    vmem_est = 2 * (_padded_tile_bytes(B, in_size)
                    + _padded_tile_bytes(rows_p, width)
                    + _padded_tile_bytes(width, width)
                    + _padded_tile_bytes(B, 1)) \
        + 4 * _padded_tile_bytes(B, width)
    vmem_bytes = int(min(max(vmem_est + (1 << 20), 2 << 20), 64 << 20))

    full = lambda shape: pl.BlockSpec(shape, lambda: tuple(0 for _ in shape))

    return pl.pallas_call(
        _make_kernel(B, in_size),
        grid=(),                                         # BN needs the full batch
        in_specs=[
            full((B, in_size)),        # x
            full((rows_p, width)),     # parameter slab
            full((width, width)),      # W2^T
        ],
        out_specs=full((B, 1)),
        out_shape=jax.ShapeDtypeStruct((B, 1), jnp.float32),
        compiler_params=pltpu.CompilerParams(vmem_limit_bytes=vmem_bytes),
    )(x2d, slab, w2t)


def init_params(key, input_size=2, width=32):
    """Deterministic init; PyTorch-style uniform bounds for linears,
    ones/zeros for BatchNorm affine params. Linear weights stored transposed
    as (in_features, out_features); linear_1 weight stored as (1, width)."""
    k3, k2, k1 = jax.random.split(key, 3)

    def linear_w(k, out_f, in_f):
        bound = 1.0 / jnp.sqrt(jnp.float32(in_f))
        return jax.random.uniform(k, (in_f, out_f), jnp.float32,
                                  minval=-bound, maxval=bound)

    w3t = linear_w(k3, width, input_size)        # linear_3: input_size -> width
    w2t = linear_w(k2, width, width)             # linear_2: width -> width
    bound1 = 1.0 / jnp.sqrt(jnp.float32(width))
    w1 = jax.random.uniform(k1, (1, width), jnp.float32,
                            minval=-bound1, maxval=bound1)   # linear_1 row
    g2 = jnp.ones((1, width), jnp.float32)
    b2 = jnp.zeros((1, width), jnp.float32)
    g1 = jnp.ones((1, width), jnp.float32)
    b1 = jnp.zeros((1, width), jnp.float32)
    return (w3t, g2, b2, w2t, g1, b1, w1)


def lnn3_reference(x, params):
    """Pure-JAX reference of the same forward pass (two-pass BN stats)."""
    w3t, g2, b2, w2t, g1, b1, w1 = params

    def bn(h, gamma, beta):
        mean = jnp.mean(h, axis=0, keepdims=True)
        var = jnp.mean((h - mean) ** 2, axis=0, keepdims=True)
        return (h - mean) * lax.rsqrt(var + BN_EPS) * gamma + beta

    h = x.reshape(x.shape[0], -1).astype(jnp.float32)
    h = h @ w3t
    h = bn(h, g2, b2)
    h = h @ w2t
    h = bn(h, g1, b1)
    return h @ w1.T


if __name__ == "__main__":
    INPUT_SIZE = 2   # module default
    WIDTH = 32       # args.width
    BATCH = 8

    key = jax.random.PRNGKey(0)
    kx, kp = jax.random.split(key)
    x = jax.random.normal(kx, (BATCH, INPUT_SIZE), jnp.float32)
    params = init_params(kp, input_size=INPUT_SIZE, width=WIDTH)

    out = lnn3_forward(x, params)
    out = jax.block_until_ready(out)

    ref = lnn3_reference(x, params)
    assert out.shape == (BATCH, 1)
    assert jnp.allclose(out, ref, atol=1e-4, rtol=1e-5), (
        f"max abs diff = {jnp.max(jnp.abs(out - ref))}")

    print("KERNEL_OK")
</pallas_src>

<mosaic_0001>
module attributes {stable_mosaic.version = 11 : i64} {
  func.func @kernel(%arg0: memref<8x2xf32, #tpu.memory_space<vmem>>, %arg1: memref<8x32xf32, #tpu.memory_space<vmem>>, %arg2: memref<32x32xf32, #tpu.memory_space<vmem>>, %arg3: memref<8x1xf32, #tpu.memory_space<vmem>>) attributes {dimension_semantics = [], scalar_prefetch = 0 : i64, scratch_operands = 0 : i64, tpu.core_type = #tpu.core_type<tc>} {
    %c0 = arith.constant 0 : index
    %c0_0 = arith.constant 0 : index
    %0 = vector.load %arg0[%c0, %c0_0] : memref<8x2xf32, #tpu.memory_space<vmem>>, vector<8x2xf32>
    %c0_1 = arith.constant 0 : index
    %c0_2 = arith.constant 0 : index
    %1 = vector.load %arg1[%c0_1, %c0_2] : memref<8x32xf32, #tpu.memory_space<vmem>>, vector<8x32xf32>
    %2 = vector.extract_strided_slice %0 {offsets = [0, 0], sizes = [8, 1], strides = [1, 1]} : vector<8x2xf32> to vector<8x1xf32>
    %3 = vector.extract_strided_slice %1 {offsets = [0, 0], sizes = [1, 32], strides = [1, 1]} : vector<8x32xf32> to vector<1x32xf32>
    %4 = vector.broadcast %2 : vector<8x1xf32> to vector<8x32xf32>
    %5 = vector.broadcast %3 : vector<1x32xf32> to vector<8x32xf32>
    %6 = arith.mulf %4, %5 : vector<8x32xf32>
    %7 = vector.extract_strided_slice %0 {offsets = [0, 1], sizes = [8, 1], strides = [1, 1]} : vector<8x2xf32> to vector<8x1xf32>
    %8 = vector.extract_strided_slice %1 {offsets = [1, 0], sizes = [1, 32], strides = [1, 1]} : vector<8x32xf32> to vector<1x32xf32>
    %9 = vector.broadcast %7 : vector<8x1xf32> to vector<8x32xf32>
    %10 = vector.broadcast %8 : vector<1x32xf32> to vector<8x32xf32>
    %11 = arith.mulf %9, %10 : vector<8x32xf32>
    %12 = arith.addf %6, %11 : vector<8x32xf32>
    %13 = vector.extract_strided_slice %1 {offsets = [2, 0], sizes = [1, 32], strides = [1, 1]} : vector<8x32xf32> to vector<1x32xf32>
    %14 = vector.extract_strided_slice %1 {offsets = [3, 0], sizes = [1, 32], strides = [1, 1]} : vector<8x32xf32> to vector<1x32xf32>
    %cst = arith.constant dense<0.000000e+00> : vector<32xf32>
    %15 = vector.multi_reduction <add>, %12, %cst [0] : vector<8x32xf32> to vector<32xf32>
    %16 = vector.shape_cast %15 : vector<32xf32> to vector<1x32xf32>
    %17 = arith.mulf %12, %12 : vector<8x32xf32>
    %cst_3 = arith.constant dense<0.000000e+00> : vector<32xf32>
    %18 = vector.multi_reduction <add>, %17, %cst_3 [0] : vector<8x32xf32> to vector<32xf32>
    %19 = vector.shape_cast %18 : vector<32xf32> to vector<1x32xf32>
    %cst_4 = arith.constant 1.250000e-01 : f32
    %20 = vector.broadcast %cst_4 : f32 to vector<1x32xf32>
    %21 = arith.mulf %16, %20 : vector<1x32xf32>
    %cst_5 = arith.constant 1.250000e-01 : f32
    %22 = vector.broadcast %cst_5 : f32 to vector<1x32xf32>
    %23 = arith.mulf %19, %22 : vector<1x32xf32>
    %24 = arith.mulf %21, %21 : vector<1x32xf32>
    %25 = arith.subf %23, %24 : vector<1x32xf32>
    %cst_6 = arith.constant 0.000000e+00 : f32
    %26 = vector.broadcast %cst_6 : f32 to vector<1x32xf32>
    %27 = arith.maximumf %25, %26 : vector<1x32xf32>
    %cst_7 = arith.constant 9.99999974E-6 : f32
    %28 = vector.broadcast %cst_7 : f32 to vector<1x32xf32>
    %29 = arith.addf %27, %28 : vector<1x32xf32>
    %30 = math.rsqrt %29 : vector<1x32xf32>
    %31 = arith.mulf %13, %30 : vector<1x32xf32>
    %32 = arith.mulf %21, %31 : vector<1x32xf32>
    %33 = arith.subf %14, %32 : vector<1x32xf32>
    %34 = vector.broadcast %31 : vector<1x32xf32> to vector<8x32xf32>
    %35 = arith.mulf %12, %34 : vector<8x32xf32>
    %36 = vector.broadcast %33 : vector<1x32xf32> to vector<8x32xf32>
    %37 = arith.addf %35, %36 : vector<8x32xf32>
    %c0_8 = arith.constant 0 : index
    %c0_9 = arith.constant 0 : index
    %38 = vector.load %arg2[%c0_8, %c0_9] : memref<32x32xf32, #tpu.memory_space<vmem>>, vector<32x32xf32>
    %cst_10 = arith.constant dense<0.000000e+00> : vector<8x32xf32>
    %39 = tpu.matmul %37, %38, %cst_10 {dimension_numbers = #tpu.dot_dimension_numbers<[1], [0], [0], [1], [0, 0, 1, 1], [], []>} : vector<8x32xf32>, vector<32x32xf32>, vector<8x32xf32> -> vector<8x32xf32>
    %40 = vector.extract_strided_slice %1 {offsets = [4, 0], sizes = [1, 32], strides = [1, 1]} : vector<8x32xf32> to vector<1x32xf32>
    %41 = vector.extract_strided_slice %1 {offsets = [5, 0], sizes = [1, 32], strides = [1, 1]} : vector<8x32xf32> to vector<1x32xf32>
    %cst_11 = arith.constant dense<0.000000e+00> : vector<32xf32>
    %42 = vector.multi_reduction <add>, %39, %cst_11 [0] : vector<8x32xf32> to vector<32xf32>
    %43 = vector.shape_cast %42 : vector<32xf32> to vector<1x32xf32>
    %44 = arith.mulf %39, %39 : vector<8x32xf32>
    %cst_12 = arith.constant dense<0.000000e+00> : vector<32xf32>
    %45 = vector.multi_reduction <add>, %44, %cst_12 [0] : vector<8x32xf32> to vector<32xf32>
    %46 = vector.shape_cast %45 : vector<32xf32> to vector<1x32xf32>
    %cst_13 = arith.constant 1.250000e-01 : f32
    %47 = vector.broadcast %cst_13 : f32 to vector<1x32xf32>
    %48 = arith.mulf %43, %47 : vector<1x32xf32>
    %cst_14 = arith.constant 1.250000e-01 : f32
    %49 = vector.broadcast %cst_14 : f32 to vector<1x32xf32>
    %50 = arith.mulf %46, %49 : vector<1x32xf32>
    %51 = arith.mulf %48, %48 : vector<1x32xf32>
    %52 = arith.subf %50, %51 : vector<1x32xf32>
    %cst_15 = arith.constant 0.000000e+00 : f32
    %53 = vector.broadcast %cst_15 : f32 to vector<1x32xf32>
    %54 = arith.maximumf %52, %53 : vector<1x32xf32>
    %cst_16 = arith.constant 9.99999974E-6 : f32
    %55 = vector.broadcast %cst_16 : f32 to vector<1x32xf32>
    %56 = arith.addf %54, %55 : vector<1x32xf32>
    %57 = math.rsqrt %56 : vector<1x32xf32>
    %58 = arith.mulf %40, %57 : vector<1x32xf32>
    %59 = arith.mulf %48, %58 : vector<1x32xf32>
    %60 = arith.subf %41, %59 : vector<1x32xf32>
    %61 = vector.broadcast %58 : vector<1x32xf32> to vector<8x32xf32>
    %62 = arith.mulf %39, %61 : vector<8x32xf32>
    %63 = vector.broadcast %60 : vector<1x32xf32> to vector<8x32xf32>
    %64 = arith.addf %62, %63 : vector<8x32xf32>
    %65 = vector.extract_strided_slice %1 {offsets = [6, 0], sizes = [1, 32], strides = [1, 1]} : vector<8x32xf32> to vector<1x32xf32>
    %66 = vector.broadcast %65 : vector<1x32xf32> to vector<8x32xf32>
    %67 = arith.mulf %64, %66 : vector<8x32xf32>
    %cst_17 = arith.constant dense<0.000000e+00> : vector<8xf32>
    %68 = vector.multi_reduction <add>, %67, %cst_17 [1] : vector<8x32xf32> to vector<8xf32>
    %69 = vector.shape_cast %68 : vector<8xf32> to vector<8x1xf32>
    %c0_18 = arith.constant 0 : index
    %c0_19 = arith.constant 0 : index
    %70 = vector.load %arg3[%c0_18, %c0_19] : memref<8x1xf32, #tpu.memory_space<vmem>>, vector<8x1xf32>
    tpu.vector_store %arg3[%c0_18, %c0_19], %69 {strides = array<i32>} : memref<8x1xf32, #tpu.memory_space<vmem>>, vector<8x1xf32>,
    return
  }
}

</mosaic_0001>

<bundles_post_ra>
// kernel: lnn3_forward.1
= control target key start
LH: loop header
LB: loop body
LE: loop exit
PB: predicated region body
PF: predicated region fallthrough
CT: control target
= control target key end

     0   :  { %v238_v0 = vmov 0   ;;  %v239_v2 = vmov 1   ;;  %v240_v6 = vmov 0.0|0.0   ;;  %vm241_vm0 = vmmov 0   ;;  %s308_s0 = inlined_call_operand.vmem [shape: f32[8,2], index: 0, kind: input, shape index: {}]   ;;  %s309_s2 = inlined_call_operand.vmem [shape: f32[32,32], index: 2, kind: input, shape index: {}]   ;;  %s310_s1 = inlined_call_operand.vmem [shape: f32[8,32], index: 1, kind: input, shape index: {}]   ;;  %s311_s3 = inlined_call_operand.vmem [shape: f32[8,1], index: 3, kind: output, shape index: {}]  }
   0x1   :  { %232 = vset.pattern.permute.xlu0 %v238_v0  ;;  %v14_v1 = vld [vmem:[%s308_s0] sm:$0xff]  ;;  %v76_v4 = vld [vmem:[%s309_s2 + $0x8] sm:$0xff]  ;;  %221 = vmatprep.subr.bf16.mxu0 %v240_v6  ;;  %v77_v7 = vld [vmem:[%s309_s2 + $0x10] sm:$0xff]  ;;  %v242_v10 = vmov 0.0   ;;  %v21_v11 = vlaneseq  ;;  %vm36_vm1 = vcmask 261120   ;;  %vm198_vm2 = vcmask 7168  }
   0x2   :  { %18 = vperm.xlu0 %232, %v14_v1   ;;  %v75_v3 = vld [vmem:[%s309_s2] sm:$0xff]  ;;  %v78_v8 = vld [vmem:[%s309_s2 + $0x18] sm:$0xff]  ;;  %218 = vmatprep.mubr.msk.f32.mxu0 %vm241_vm0, %v242_v10 }
   0x3   :  { %v222_v5 = vpack.c.bf16 %v76_v4, %v75_v3  ;;  %v225_v9 = vpack.c.bf16 %v78_v8, %v77_v7  ;;  %v278_v12 = vshrl.u32 %v21_v11, 7  ;;  %v285_v15 = vld [vmem:[%s310_s1] sm:$0xff] }
   0x5   :  { %223 = vmatpush3.bf16.msra.mxu0 %v222_v5  ;;  %v23_v13 = vsub.s32 0, %v278_v12  ;;  %v32_v14 = vsub.s32 1, %v278_v12  ;;  %v67_v45 = vsub.s32 2, %v278_v12  ;;  %v72_v50 = vsub.s32 3, %v278_v12 }
   0x6   :  { %233 = vset.pattern.permute.xlu0 %v239_v2  ;;  %224 = vmatprep.subr.bf16.mxu0 %v240_v6 }
   0x7   :  { %27 = vperm.xlu0 %233, %v14_v1   ;;  %v24_v17 = vrot.slane %v285_v15, %v23_v13  ;;  %v33_v18 = vrot.slane %v285_v15, %v32_v14 }
   0x9   :  { %226 = vmatpush3.bf16.msra.mxu0 %v225_v9 }
  0x81   :  { %v19_v16 = vpop.permute.xlu0 %18 }
  0x82   :  { %v25_v20 = vmul.f32 %v24_v17, %v19_v16 }
  0x86   :  { %v28_v19 = vpop.permute.xlu0 %27 }
  0x87   :  { %v34_v21 = vmul.f32 %v33_v18, %v28_v19  ;;  %v182_v18 = vsub.s32 4, %v278_v12 }
  0x89   :  { %v35_v22 = vadd.f32 %v34_v21, %v25_v20 }
  0x8b   :  { %v37_v23 = vsel %vm36_vm1, %v35_v22, 0.0  ;;  %v44_v24 = vmul.f32 %v35_v22, %v35_v22 }
  0x8c   :  { %v38_v25 = vrot.slane %v37_v23, 4 }
  0x8d   :  { %v45_v26 = vsel %vm36_vm1, %v44_v24, 0.0 }
  0x8e   :  { %v39_v27 = vadd.f32 %v38_v25, %v37_v23  ;;  %v46_v28 = vrot.slane %v45_v26, 4  ;;  %v192_v23 = vsub.s32 6, %v278_v12 }
  0x90   :  { %v40_v29 = vrot.slane %v39_v27, 2  ;;  %v47_v30 = vadd.f32 %v46_v28, %v45_v26 }
  0x92   :  { %v41_v31 = vadd.f32 %v40_v29, %v39_v27  ;;  %v48_v32 = vrot.slane %v47_v30, 2  ;;  %v193_v27 = vrot.slane %v285_v15, %v192_v23 }
  0x94   :  { %v42_v33 = vrot.slane %v41_v31, 1  ;;  %v49_v34 = vadd.f32 %v48_v32, %v47_v30 }
  0x96   :  { %v43_v35 = vadd.f32 %v42_v33, %v41_v31  ;;  %v50_v36 = vrot.slane %v49_v34, 1 }
  0x98   :  { %v51_v37 = vadd.f32 %v50_v36, %v49_v34  ;;  %v52_v38 = vmul.f32 0.125, %v43_v35 }
  0x9a   :  { %v53_v39 = vmul.f32 0.125, %v51_v37  ;;  %v54_v40 = vmul.f32 %v52_v38, %v52_v38 }
  0x9c   :  { %v55_v41 = vsub.f32 %v53_v39, %v54_v40 }
  0x9e   :  { %v56_v42 = vmax.f32 %v55_v41, 0.0 }
  0xa0   :  { %v57_v43 = vadd.f32 1e-05, %v56_v42 }
  0xa2   :  { %234 = vrsqrt.f32 %v57_v43 }
  0xac   :  { %v235_v44 = vpop.eup %234 }
  0xad   :  { %v59_v46 = vmul.f32 %v235_v44, %v285_v15 }
  0xaf   :  { %v60_v47 = vmul.f32 %v59_v46, %v52_v38  ;;  %v68_v48 = vrot.slane %v59_v46, %v67_v45 }
  0xb1   :  { %v62_v49 = vrot.slane %v60_v47, 7  ;;  %v69_v52 = vmul.f32 %v68_v48, %v35_v22  ;;  %v187_v22 = vsub.s32 5, %v278_v12 }
  0xb3   :  { %v64_v51 = vsub.f32 %v285_v15, %v62_v49 }
  0xb5   :  { %v73_v53 = vrot.slane %v64_v51, %v72_v50 }
  0xb7   :  { %v74_v54 = vadd.f32 %v73_v53, %v69_v52 }
  0xb9   :  { %219 = vmatmul.mubr.msk.f32.vlgmr.msra.gmra.mrb[0].mxu0 %vm36_vm1, %v74_v54 }
 0x18c   :  { %v148_v55 = vpop.f32.mrb[0].mxu0 }
 0x18d   :  { %v152_v56 = vsel %vm36_vm1, %v148_v55, 0.0  ;;  %v159_v57 = vmul.f32 %v148_v55, %v148_v55  ;;  %v220_v58 = vpop.f32.mrb[1].mxu0 }
 0x18e   :  { %v153_v59 = vrot.slane %v152_v56, 4 }
 0x18f   :  { %v160_v60 = vsel %vm36_vm1, %v159_v57, 0.0 }
 0x190   :  { %v154_v61 = vadd.f32 %v153_v59, %v152_v56  ;;  %v161_v62 = vrot.slane %v160_v60, 4 }
 0x192   :  { %v155_v63 = vrot.slane %v154_v61, 2  ;;  %v162_v0 = vadd.f32 %v161_v62, %v160_v60 }
 0x194   :  { %v156_v1 = vadd.f32 %v155_v63, %v154_v61  ;;  %v163_v2 = vrot.slane %v162_v0, 2 }
 0x196   :  { %v157_v3 = vrot.slane %v156_v1, 1  ;;  %v164_v4 = vadd.f32 %v163_v2, %v162_v0 }
 0x198   :  { %v158_v5 = vadd.f32 %v157_v3, %v156_v1  ;;  %v165_v6 = vrot.slane %v164_v4, 1 }
 0x19a   :  { %v166_v7 = vadd.f32 %v165_v6, %v164_v4  ;;  %v167_v8 = vmul.f32 0.125, %v158_v5 }
 0x19c   :  { %v168_v9 = vmul.f32 0.125, %v166_v7  ;;  %v169_v10 = vmul.f32 %v167_v8, %v167_v8 }
 0x19e   :  { %v170_v11 = vsub.f32 %v168_v9, %v169_v10 }
 0x1a0   :  { %v171_v13 = vmax.f32 %v170_v11, 0.0 }
 0x1a2   :  { %v172_v14 = vadd.f32 1e-05, %v171_v13 }
 0x1a4   :  { %236 = vrsqrt.f32 %v172_v14 }
 0x1ae   :  { %v237_v16 = vpop.eup %236 }
 0x1af   :  { %v174_v17 = vmul.f32 %v237_v16, %v285_v15 }
 0x1b1   :  { %v175_v19 = vmul.f32 %v174_v17, %v167_v8  ;;  %v183_v20 = vrot.slane %v174_v17, %v182_v18 }
 0x1b3   :  { %v177_v21 = vrot.slane %v175_v19, 7  ;;  %v184_v25 = vmul.f32 %v183_v20, %v148_v55 }
 0x1b5   :  { %v179_v24 = vsub.f32 %v285_v15, %v177_v21 }
 0x1b7   :  { %v188_v26 = vrot.slane %v179_v24, %v187_v22 }
 0x1b9   :  { %v189_v28 = vadd.f32 %v188_v26, %v184_v25 }
 0x1bb   :  { %v194_v29 = vmul.f32 %v193_v27, %v189_v28 }
 0x1bd   :  { %v195_v30 = vsel %vm36_vm1, %v194_v29, 0.0 }
 0x1be   :  { %196 = vadd.xlane.f32.xlu1 %v195_v30 }
 0x24b   :  { %v197_v31 = vpop.xlane.xlu1 %196 }
 0x24c   :  { %199 = vst.msk [vmem:[%s311_s3] sm:$0xff] %vm198_vm2, %v197_v31 }

</bundles_post_ra>
